<compile_context>
chip_gen: v6e
topology: v6e:2x2x1
jax: 0.10.0
libtpu: 0.0.40
codegen_flags: <defaults>
</compile_context>

<pallas_src>
import functools

import jax
import jax.numpy as jnp
from jax.experimental import pallas as pl
from jax.experimental.pallas import tpu as pltpu


def _round_up(x: int, m: int) -> int:
    return ((x + m - 1) // m) * m


def mlp_kernel(x_ref, w1_ref, b1_ref, w2_ref, b2_ref, w3_ref, b3_ref, o_ref):
    # One (tb, in_ch) batch slab per grid step; weights/biases are VMEM-resident
    # (constant index_map -> DMA'd once).  All-f32 compute, f32 accumulation.
    x = x_ref[...]                                                   # (tb, in_ch) f32
    h1 = jnp.tanh(
        jnp.dot(x, w1_ref[...], preferred_element_type=jnp.float32) + b1_ref[...]
    )
    h2 = jnp.tanh(
        jnp.dot(h1, w2_ref[...], preferred_element_type=jnp.float32) + b2_ref[...]
    )
    out = jnp.dot(h2, w3_ref[...], preferred_element_type=jnp.float32) + b3_ref[...]
    o_ref[...] = out.astype(o_ref.dtype)                             # (tb, out_ch), un-padded


def preprocess_params(params):
    """One-time parameter prep (call ONCE, outside the per-step forward).

    Zero-pads the hidden width up to a multiple of 128 lanes so h1/h2 and the
    tanh/bias ops are lane-dense and the middle matmuls run native 128-wide
    MXU tiles.  Padded hidden units see zero weights/biases (tanh(0)=0) and
    multiply zero rows of w3, so the result is unchanged.
    """
    nhid = params["w1"].shape[1]
    hp = _round_up(nhid, 128)
    ph = hp - nhid
    f32 = jnp.float32
    return {
        "w1": jnp.pad(params["w1"].astype(f32), ((0, 0), (0, ph))),
        "b1": jnp.pad(params["b1"].astype(f32), ((0, 0), (0, ph))),
        "w2": jnp.pad(params["w2"].astype(f32), ((0, ph), (0, ph))),
        "b2": jnp.pad(params["b2"].astype(f32), ((0, 0), (0, ph))),
        "w3": jnp.pad(params["w3"].astype(f32), ((0, ph), (0, 0))),
        "b3": params["b3"].astype(f32),
    }


@functools.partial(jax.jit, static_argnames=("tile_b",))
def q_forward(x, pparams, *, tile_b: int = 2048):
    """Forward pass.

    x: (B, in_channels) float32.
    pparams: output of preprocess_params (hidden width already padded to 128k).
    """
    B, in_ch = x.shape
    hp = pparams["w1"].shape[1]          # padded hidden width (multiple of 128)
    out_ch = pparams["w3"].shape[1]

    # ---- batch tiling ------------------------------------------------------
    # At most tile_b rows per grid step, but never more than ceil(B/2) rounded
    # to 16, so once B > 16 the grid has >= 2 steps and the "parallel" batch
    # axis actually splits across v7x's two TensorCores.
    half = _round_up(pl.cdiv(B, 2), 16)
    tb = max(16, min(_round_up(tile_b, 16), half))
    B_pad = _round_up(B, tb)
    x_p = x if B_pad == B else jnp.pad(x, ((0, B_pad - B), (0, 0)))

    grid = (B_pad // tb,)

    # Advisory cost hint for XLA's scheduler (honest, un-padded byte counts).
    flops = 2 * B_pad * (in_ch * hp + hp * hp + hp * out_ch)
    transcendentals = 2 * B_pad * hp
    bytes_accessed = 4 * (
        B_pad * in_ch                              # x read (f32)
        + B_pad * out_ch                           # output write (f32, un-padded)
        + in_ch * hp + hp * hp + hp * out_ch       # weights (read once, VMEM-resident)
        + 2 * hp + out_ch                          # biases
    )
    cost = pl.CostEstimate(
        flops=flops, transcendentals=transcendentals, bytes_accessed=bytes_accessed
    )

    # Weights/biases: constant block index -> DMA'd once, stay VMEM-resident.
    const = lambda a: pl.BlockSpec(a.shape, lambda i: (0, 0))

    out = pl.pallas_call(
        mlp_kernel,
        out_shape=jax.ShapeDtypeStruct((B_pad, out_ch), jnp.float32),
        grid=grid,
        in_specs=[
            pl.BlockSpec((tb, in_ch), lambda i: (i, 0)),   # x: streamed by batch tile
            const(pparams["w1"]),
            const(pparams["b1"]),
            const(pparams["w2"]),
            const(pparams["b2"]),
            const(pparams["w3"]),
            const(pparams["b3"]),
        ],
        # Un-padded output: block last dim == full array dim (legal).  The HBM
        # writeback per step is one contiguous tb*out_ch*4-byte region.
        out_specs=pl.BlockSpec((tb, out_ch), lambda i: (i, 0)),
        compiler_params=pltpu.CompilerParams(
            dimension_semantics=("parallel",),             # v7x: shard batch over 2 TCs
        ),
        cost_estimate=cost,
    )(x_p, pparams["w1"], pparams["b1"], pparams["w2"], pparams["b2"],
      pparams["w3"], pparams["b3"])

    return out[:B, :]


def init_params(key, in_channels, nhid, out_channels):
    """Deterministic init mimicking nn.Linear's U(-1/sqrt(fan_in), 1/sqrt(fan_in))."""
    ks = jax.random.split(key, 6)

    def linear(kw, kb, fan_in, fan_out):
        bound = 1.0 / jnp.sqrt(jnp.float32(fan_in))
        w = jax.random.uniform(kw, (fan_in, fan_out), jnp.float32, -bound, bound)
        b = jax.random.uniform(kb, (1, fan_out), jnp.float32, -bound, bound)
        return w, b

    w1, b1 = linear(ks[0], ks[1], in_channels, nhid)
    w2, b2 = linear(ks[2], ks[3], nhid, nhid)
    w3, b3 = linear(ks[4], ks[5], nhid, out_channels)
    return {"w1": w1, "b1": b1, "w2": w2, "b2": b2, "w3": w3, "b3": b3}


def _ref_forward(x, params):
    """Pure-JAX f32 reference."""
    h1 = jnp.tanh(
        jnp.dot(x, params["w1"], preferred_element_type=jnp.float32) + params["b1"]
    )
    h2 = jnp.tanh(
        jnp.dot(h1, params["w2"], preferred_element_type=jnp.float32) + params["b2"]
    )
    return jnp.dot(h2, params["w3"], preferred_element_type=jnp.float32) + params["b3"]


if __name__ == "__main__":
    # Small shapes consistent with Q(in_channels, out_channels, nhid=64).
    in_channels = 4
    nhid = 64
    out_channels = 8

    key = jax.random.PRNGKey(0)
    k_x, k_p, k_x2 = jax.random.split(key, 3)
    params = init_params(k_p, in_channels, nhid, out_channels)
    pparams = preprocess_params(params)    # one-time prep, hoisted out of forward

    # Tolerance covers TPU default-precision f32 matmul variation between the
    # Mosaic kernel and the XLA reference.
    ATOL = RTOL = 3e-2

    # --- case 1: tiny batch (single grid step) ------------------------------
    batch = 8
    x = jax.random.normal(k_x, (batch, in_channels), jnp.float32)
    out = jax.block_until_ready(q_forward(x, pparams))
    assert out.shape == (batch, out_channels)
    ref = _ref_forward(x, params)
    assert jnp.allclose(out, ref, atol=ATOL, rtol=RTOL), float(jnp.max(jnp.abs(out - ref)))

    # --- case 2: larger batch exercising the tiled / multi-step grid --------
    batch2 = 512
    x2 = jax.random.normal(k_x2, (batch2, in_channels), jnp.float32)
    out2 = jax.block_until_ready(q_forward(x2, pparams, tile_b=128))
    assert out2.shape == (batch2, out_channels)
    ref2 = _ref_forward(x2, params)
    assert jnp.allclose(out2, ref2, atol=ATOL, rtol=RTOL), float(jnp.max(jnp.abs(out2 - ref2)))

    print("KERNEL_OK")
</pallas_src>

<mosaic_0001>
module attributes {stable_mosaic.version = 11 : i64} {
  func.func @mlp_kernel(%arg0: i32, %arg1: memref<16x4xf32, #tpu.memory_space<vmem>>, %arg2: memref<4x128xf32, #tpu.memory_space<vmem>>, %arg3: memref<1x128xf32, #tpu.memory_space<vmem>>, %arg4: memref<128x128xf32, #tpu.memory_space<vmem>>, %arg5: memref<1x128xf32, #tpu.memory_space<vmem>>, %arg6: memref<128x8xf32, #tpu.memory_space<vmem>>, %arg7: memref<1x8xf32, #tpu.memory_space<vmem>>, %arg8: memref<16x8xf32, #tpu.memory_space<vmem>>) attributes {dimension_semantics = [#tpu.dimension_semantics<parallel>], iteration_bounds = array<i64: 1>, scalar_prefetch = 0 : i64, scratch_operands = 0 : i64, tpu.core_type = #tpu.core_type<tc>, window_params = [{transform_indices = @transform_0, window_bounds = array<i64: 16, 4>}, {pipeline_mode = #tpu.pipeline_mode<synchronous>, transform_indices = @transform_1, window_bounds = array<i64: 4, 128>}, {pipeline_mode = #tpu.pipeline_mode<synchronous>, transform_indices = @transform_2, window_bounds = array<i64: 1, 128>}, {pipeline_mode = #tpu.pipeline_mode<synchronous>, transform_indices = @transform_3, window_bounds = array<i64: 128, 128>}, {pipeline_mode = #tpu.pipeline_mode<synchronous>, transform_indices = @transform_4, window_bounds = array<i64: 1, 128>}, {pipeline_mode = #tpu.pipeline_mode<synchronous>, transform_indices = @transform_5, window_bounds = array<i64: 128, 8>}, {pipeline_mode = #tpu.pipeline_mode<synchronous>, transform_indices = @transform_6, window_bounds = array<i64: 1, 8>}, {transform_indices = @transform_7, window_bounds = array<i64: 16, 8>}]} {
    %c0 = arith.constant 0 : index
    %c0_0 = arith.constant 0 : index
    %0 = vector.load %arg1[%c0, %c0_0] : memref<16x4xf32, #tpu.memory_space<vmem>>, vector<16x4xf32>
    %c0_1 = arith.constant 0 : index
    %c0_2 = arith.constant 0 : index
    %1 = vector.load %arg2[%c0_1, %c0_2] : memref<4x128xf32, #tpu.memory_space<vmem>>, vector<4x128xf32>
    %cst = arith.constant dense<0.000000e+00> : vector<16x128xf32>
    %2 = tpu.matmul %0, %1, %cst {dimension_numbers = #tpu.dot_dimension_numbers<[1], [0], [0], [1], [0, 0, 1, 1], [], []>} : vector<16x4xf32>, vector<4x128xf32>, vector<16x128xf32> -> vector<16x128xf32>
    %c0_3 = arith.constant 0 : index
    %c0_4 = arith.constant 0 : index
    %3 = vector.load %arg3[%c0_3, %c0_4] : memref<1x128xf32, #tpu.memory_space<vmem>>, vector<1x128xf32>
    %4 = vector.broadcast %3 : vector<1x128xf32> to vector<16x128xf32>
    %5 = arith.addf %2, %4 : vector<16x128xf32>
    %6 = math.tanh %5 : vector<16x128xf32>
    %c0_5 = arith.constant 0 : index
    %c0_6 = arith.constant 0 : index
    %7 = vector.load %arg4[%c0_5, %c0_6] : memref<128x128xf32, #tpu.memory_space<vmem>>, vector<128x128xf32>
    %cst_7 = arith.constant dense<0.000000e+00> : vector<16x128xf32>
    %8 = tpu.matmul %6, %7, %cst_7 {dimension_numbers = #tpu.dot_dimension_numbers<[1], [0], [0], [1], [0, 0, 1, 1], [], []>} : vector<16x128xf32>, vector<128x128xf32>, vector<16x128xf32> -> vector<16x128xf32>
    %c0_8 = arith.constant 0 : index
    %c0_9 = arith.constant 0 : index
    %9 = vector.load %arg5[%c0_8, %c0_9] : memref<1x128xf32, #tpu.memory_space<vmem>>, vector<1x128xf32>
    %10 = vector.broadcast %9 : vector<1x128xf32> to vector<16x128xf32>
    %11 = arith.addf %8, %10 : vector<16x128xf32>
    %12 = math.tanh %11 : vector<16x128xf32>
    %c0_10 = arith.constant 0 : index
    %c0_11 = arith.constant 0 : index
    %13 = vector.load %arg6[%c0_10, %c0_11] : memref<128x8xf32, #tpu.memory_space<vmem>>, vector<128x8xf32>
    %cst_12 = arith.constant dense<0.000000e+00> : vector<16x8xf32>
    %14 = tpu.matmul %12, %13, %cst_12 {dimension_numbers = #tpu.dot_dimension_numbers<[1], [0], [0], [1], [0, 0, 1, 1], [], []>} : vector<16x128xf32>, vector<128x8xf32>, vector<16x8xf32> -> vector<16x8xf32>
    %c0_13 = arith.constant 0 : index
    %c0_14 = arith.constant 0 : index
    %15 = vector.load %arg7[%c0_13, %c0_14] : memref<1x8xf32, #tpu.memory_space<vmem>>, vector<1x8xf32>
    %16 = vector.broadcast %15 : vector<1x8xf32> to vector<16x8xf32>
    %17 = arith.addf %14, %16 : vector<16x8xf32>
    %c0_15 = arith.constant 0 : index
    %c0_16 = arith.constant 0 : index
    %18 = vector.load %arg8[%c0_15, %c0_16] : memref<16x8xf32, #tpu.memory_space<vmem>>, vector<16x8xf32>
    tpu.vector_store %arg8[%c0_15, %c0_16], %17 {strides = array<i32>} : memref<16x8xf32, #tpu.memory_space<vmem>>, vector<16x8xf32>,
    return
  }
  func.func @transform_0(%arg0: i32) -> (i32, i32) {
    %c0_i32 = arith.constant 0 : i32
    %c0_i32_0 = arith.constant 0 : i32
    return %arg0, %c0_i32 : i32, i32
  }
  func.func @transform_1(%arg0: i32) -> (i32, i32) {
    %c0_i32 = arith.constant 0 : i32
    %c0_i32_0 = arith.constant 0 : i32
    %c0_i32_1 = arith.constant 0 : i32
    return %c0_i32, %c0_i32_0 : i32, i32
  }
  func.func @transform_2(%arg0: i32) -> (i32, i32) {
    %c0_i32 = arith.constant 0 : i32
    %c0_i32_0 = arith.constant 0 : i32
    %c0_i32_1 = arith.constant 0 : i32
    return %c0_i32, %c0_i32_0 : i32, i32
  }
  func.func @transform_3(%arg0: i32) -> (i32, i32) {
    %c0_i32 = arith.constant 0 : i32
    %c0_i32_0 = arith.constant 0 : i32
    %c0_i32_1 = arith.constant 0 : i32
    return %c0_i32, %c0_i32_0 : i32, i32
  }
  func.func @transform_4(%arg0: i32) -> (i32, i32) {
    %c0_i32 = arith.constant 0 : i32
    %c0_i32_0 = arith.constant 0 : i32
    %c0_i32_1 = arith.constant 0 : i32
    return %c0_i32, %c0_i32_0 : i32, i32
  }
  func.func @transform_5(%arg0: i32) -> (i32, i32) {
    %c0_i32 = arith.constant 0 : i32
    %c0_i32_0 = arith.constant 0 : i32
    %c0_i32_1 = arith.constant 0 : i32
    return %c0_i32, %c0_i32_0 : i32, i32
  }
  func.func @transform_6(%arg0: i32) -> (i32, i32) {
    %c0_i32 = arith.constant 0 : i32
    %c0_i32_0 = arith.constant 0 : i32
    %c0_i32_1 = arith.constant 0 : i32
    return %c0_i32, %c0_i32_0 : i32, i32
  }
  func.func @transform_7(%arg0: i32) -> (i32, i32) {
    %c0_i32 = arith.constant 0 : i32
    %c0_i32_0 = arith.constant 0 : i32
    return %arg0, %c0_i32 : i32, i32
  }
}

</mosaic_0001>

<bundles_post_ra>
// kernel: q_forward.1
= control target key start
LH: loop header
LB: loop body
LE: loop exit
PB: predicated region body
PF: predicated region fallthrough
CT: control target
= control target key end

     0   :  { %vm43_vm0 = vcmask 1043456   ;;  %vm36_vm1 = vcmask 31744   ;;  %vm322_vm2 = vcmask 64512   ;;  %s617_s1 = inlined_call_operand.vmem [shape: f32[4,128], index: 1, kind: input, shape index: {}]   ;;  %s618_s0 = inlined_call_operand.vmem [shape: f32[16,4], index: 0, kind: input, shape index: {}]   ;;  %s619_s3 = inlined_call_operand.vmem [shape: f32[128,128], index: 3, kind: input, shape index: {}]   ;;  %s620_s5 = inlined_call_operand.vmem [shape: f32[128,8], index: 5, kind: input, shape index: {}]   ;;  %s621_s2 = inlined_call_operand.vmem [shape: f32[1,128], index: 2, kind: input, shape index: {}]   ;;  %s622_s4 = inlined_call_operand.vmem [shape: f32[1,128], index: 4, kind: input, shape index: {}]   ;;  %s623_s6 = inlined_call_operand.vmem [shape: f32[1,8], index: 6, kind: input, shape index: {}]   ;;  %s624_s7 = inlined_call_operand.vmem [shape: f32[16,8], index: 7, kind: output, shape index: {}]  }
   0x1   :  { %v28_v0 = vld [vmem:[%s617_s1] sm:$0xf]  ;;  %v27_v2 = vld [vmem:[%s618_s0 + $0x8] sm:$0xff]  ;;  %v139_v3 = vld [vmem:[%s619_s3 + $0x78] sm:$0xff] }
   0x2   :  { %v26_v1 = vld [vmem:[%s618_s0] sm:$0xff]  ;;  %374 = vmatprep.subr.msk.mxu0 %vm43_vm0, %v28_v0  ;;  %v138_v4 = vld [vmem:[%s619_s3 + $0x70] sm:$0xff]  ;;  %379 = vmatprep.subr.mxu1 %v139_v3  ;;  %v137_v5 = vld [vmem:[%s619_s3 + $0x68] sm:$0xff] }
   0x3   :  { %376 = vmatprep.mubr.msk.f32.mxu0 %vm36_vm1, %v26_v1  ;;  %375 = vmatpush3.msk.msra.mxu0 %vm43_vm0, %v28_v0  ;;  %v136_v6 = vld [vmem:[%s619_s3 + $0x60] sm:$0xff]  ;;  %v135_v7 = vld [vmem:[%s619_s3 + $0x58] sm:$0xff]  ;;  %v134_v8 = vld [vmem:[%s619_s3 + $0x50] sm:$0xff] }
   0x4   :  { %377 = vmatmul.mubr.msk.f32.vlgmr.msra.gmra.mxu0 %vm36_vm1, %v27_v2  ;;  %380 = vmatpush3.msra.mxu1 %v139_v3  ;;  %v133_v9 = vld [vmem:[%s619_s3 + $0x48] sm:$0xff]  ;;  %v132_v10 = vld [vmem:[%s619_s3 + $0x40] sm:$0xff]  ;;  %v131_v11 = vld [vmem:[%s619_s3 + $0x38] sm:$0xff] }
   0x5   :  { %381 = vmatprep.subr.mxu1 %v138_v4  ;;  %v130_v12 = vld [vmem:[%s619_s3 + $0x30] sm:$0xff]  ;;  %v129_v13 = vld [vmem:[%s619_s3 + $0x28] sm:$0xff]  ;;  %v128_v14 = vld [vmem:[%s619_s3 + $0x20] sm:$0xff] }
   0x6   :  { %382 = vmatpush3.msra.mxu1 %v138_v4  ;;  %v127_v15 = vld [vmem:[%s619_s3 + $0x18] sm:$0xff]  ;;  %v126_v16 = vld [vmem:[%s619_s3 + $0x10] sm:$0xff]  ;;  %v125_v17 = vld [vmem:[%s619_s3 + $0x8] sm:$0xff] }
   0x7   :  { %383 = vmatprep.subr.mxu1 %v137_v5  ;;  %v124_v18 = vld [vmem:[%s619_s3] sm:$0xff]  ;;  %v239_v19 = vld [vmem:[%s620_s5 + $0x78] sm:$0xff]  ;;  %v238_v20 = vld [vmem:[%s620_s5 + $0x70] sm:$0xff] }
   0x8   :  { %384 = vmatpush3.msra.mxu1 %v137_v5  ;;  %414 = vmatprep.subr.mxu0 %v239_v19  ;;  %v237_v21 = vld [vmem:[%s620_s5 + $0x68] sm:$0xff]  ;;  %v236_v22 = vld [vmem:[%s620_s5 + $0x60] sm:$0xff]  ;;  %v235_v23 = vld [vmem:[%s620_s5 + $0x58] sm:$0xff] }
   0x9   :  { %385 = vmatprep.subr.mxu1 %v136_v6  ;;  %415 = vmatpush3.msra.mxu0 %v239_v19  ;;  %v234_v24 = vld [vmem:[%s620_s5 + $0x50] sm:$0xff]  ;;  %v329_v25 = vld [vmem:[%s621_s2] ss:$0 sm:$0xff]  ;;  %v233_v32 = vld [vmem:[%s620_s5 + $0x48] sm:$0xff] }
   0xa   :  { %386 = vmatpush3.msra.mxu1 %v136_v6  ;;  %416 = vmatprep.subr.mxu0 %v238_v20  ;;  %v232_v33 = vld [vmem:[%s620_s5 + $0x40] sm:$0xff]  ;;  %v231_v34 = vld [vmem:[%s620_s5 + $0x38] sm:$0xff]  ;;  %v230_v35 = vld [vmem:[%s620_s5 + $0x30] sm:$0xff] }
   0xb   :  { %387 = vmatprep.subr.mxu1 %v135_v7  ;;  %417 = vmatpush3.msra.mxu0 %v238_v20  ;;  %v229_v36 = vld [vmem:[%s620_s5 + $0x28] sm:$0xff]  ;;  %v228_v37 = vld [vmem:[%s620_s5 + $0x20] sm:$0xff]  ;;  %v227_v38 = vld [vmem:[%s620_s5 + $0x18] sm:$0xff] }
   0xc   :  { %388 = vmatpush3.msra.mxu1 %v135_v7  ;;  %418 = vmatprep.subr.mxu0 %v237_v21  ;;  %v226_v39 = vld [vmem:[%s620_s5 + $0x10] sm:$0xff]  ;;  %v225_v40 = vld [vmem:[%s620_s5 + $0x8] sm:$0xff]  ;;  %v224_v41 = vld [vmem:[%s620_s5] sm:$0xff] }
   0xd   :  { %389 = vmatprep.subr.mxu1 %v134_v8  ;;  %419 = vmatpush3.msra.mxu0 %v237_v21  ;;  %v333_v42 = vld [vmem:[%s622_s4] ss:$0 sm:$0xff] }
   0xe   :  { %390 = vmatpush3.msra.mxu1 %v134_v8  ;;  %420 = vmatprep.subr.mxu0 %v236_v22  ;;  %v334_v49 = vld [vmem:[%s623_s6] ss:$0 sm:$0xff] }
   0xf   :  { %391 = vmatprep.subr.mxu1 %v133_v9  ;;  %421 = vmatpush3.msra.mxu0 %v236_v22 }
  0x10   :  { %392 = vmatpush3.msra.mxu1 %v133_v9  ;;  %422 = vmatprep.subr.mxu0 %v235_v23 }
  0x11   :  { %393 = vmatprep.subr.mxu1 %v132_v10  ;;  %423 = vmatpush3.msra.mxu0 %v235_v23 }
  0x12   :  { %394 = vmatpush3.msra.mxu1 %v132_v10  ;;  %424 = vmatprep.subr.mxu0 %v234_v24 }
  0x13   :  { %395 = vmatprep.subr.mxu1 %v131_v11  ;;  %425 = vmatpush3.msra.mxu0 %v234_v24 }
  0x14   :  { %396 = vmatpush3.msra.mxu1 %v131_v11  ;;  %426 = vmatprep.subr.mxu0 %v233_v32 }
  0x15   :  { %397 = vmatprep.subr.mxu1 %v130_v12  ;;  %427 = vmatpush3.msra.mxu0 %v233_v32 }
  0x16   :  { %398 = vmatpush3.msra.mxu1 %v130_v12  ;;  %428 = vmatprep.subr.mxu0 %v232_v33 }
  0x17   :  { %399 = vmatprep.subr.mxu1 %v129_v13  ;;  %429 = vmatpush3.msra.mxu0 %v232_v33 }
  0x18   :  { %400 = vmatpush3.msra.mxu1 %v129_v13  ;;  %430 = vmatprep.subr.mxu0 %v231_v34 }
  0x19   :  { %401 = vmatprep.subr.mxu1 %v128_v14  ;;  %431 = vmatpush3.msra.mxu0 %v231_v34 }
  0x1a   :  { %402 = vmatpush3.msra.mxu1 %v128_v14  ;;  %432 = vmatprep.subr.mxu0 %v230_v35 }
  0x1b   :  { %403 = vmatprep.subr.mxu1 %v127_v15  ;;  %433 = vmatpush3.msra.mxu0 %v230_v35 }
  0x1c   :  { %404 = vmatpush3.msra.mxu1 %v127_v15  ;;  %434 = vmatprep.subr.mxu0 %v229_v36 }
  0x1d   :  { %405 = vmatprep.subr.mxu1 %v126_v16  ;;  %435 = vmatpush3.msra.mxu0 %v229_v36 }
  0x1e   :  { %406 = vmatpush3.msra.mxu1 %v126_v16  ;;  %436 = vmatprep.subr.mxu0 %v228_v37 }
  0x1f   :  { %407 = vmatprep.subr.mxu1 %v125_v17  ;;  %437 = vmatpush3.msra.mxu0 %v228_v37 }
  0x20   :  { %408 = vmatpush3.msra.mxu1 %v125_v17  ;;  %438 = vmatprep.subr.mxu0 %v227_v38 }
  0x21   :  { %409 = vmatprep.subr.mxu1 %v124_v18  ;;  %439 = vmatpush3.msra.mxu0 %v227_v38 }
  0x22   :  { %410 = vmatpush3.msra.mxu1 %v124_v18  ;;  %440 = vmatprep.subr.mxu0 %v226_v39 }
  0x23   :  { %441 = vmatpush3.msra.mxu0 %v226_v39 }
  0x24   :  { %442 = vmatprep.subr.mxu0 %v225_v40 }
  0x25   :  { %443 = vmatpush3.msra.mxu0 %v225_v40 }
  0x26   :  { %444 = vmatprep.subr.mxu0 %v224_v41 }
  0x27   :  { %445 = vmatpush3.msra.mxu0 %v224_v41 }
  0xc4   :  { %v378_v26 = vpop.f32.mrf.mxu0 }
  0xc5   :  { %v119_v27 = vadd.f32 %v378_v26, %v329_v25 }
  0xc6   :  { %v113_v28 = vpop.f32.mrf.mxu0 }
  0xc7   :  { %v114_v29 = vadd.f32 %v329_v25, %v113_v28 }
  0xc9   :  { %449 = vtanh.f32 %v114_v29 }
  0xca   :  { %451 = vtanh.f32 %v119_v27 }
  0xd6   :  { %v450_v30 = vpop.eup %449 }
  0xd7   :  { %v452_v31 = vpop.eup %451  ;;  %411 = vmatprep.mubr.f32.mxu1 %v450_v30 }
  0xd8   :  { %412 = vmatmul.mubr.f32.vlgmr.msra.gmra.mxu1 %v452_v31 }
 0x198   :  { %v413_v43 = vpop.f32.mrf.mxu1 }
 0x199   :  { %v219_v44 = vadd.f32 %v413_v43, %v333_v42 }
 0x19a   :  { %v213_v45 = vpop.f32.mrf.mxu1 }
 0x19b   :  { %v214_v46 = vadd.f32 %v333_v42, %v213_v45 }
 0x19d   :  { %453 = vtanh.f32 %v214_v46 }
 0x19e   :  { %455 = vtanh.f32 %v219_v44 }
 0x1aa   :  { %v454_v47 = vpop.eup %453 }
 0x1ab   :  { %v456_v48 = vpop.eup %455  ;;  %446 = vmatprep.mubr.f32.mxu0 %v454_v47 }
 0x1ac   :  { %447 = vmatmul.mubr.f32.vlgmr.msra.gmra.mxu0 %v456_v48 }
 0x26c   :  { %v448_v50 = vpop.f32.mrf.mxu0 }
 0x26d   :  { %v319_v51 = vadd.f32 %v448_v50, %v334_v49 }
 0x26e   :  { %v313_v52 = vpop.f32.mrf.mxu0 }
 0x26f   :  { %324 = vst.msk [vmem:[%s624_s7 + $0x8] sm:$0xff] %vm322_vm2, %v319_v51  ;;  %v314_v53 = vadd.f32 %v334_v49, %v313_v52 }
 0x271   :  { %323 = vst.msk [vmem:[%s624_s7] sm:$0xff] %vm322_vm2, %v314_v53 }

</bundles_post_ra>
